<compile_context>
chip_gen: v7x
topology: tpu7x:2x2x1
jax: 0.10.0
libtpu: 0.0.40
codegen_flags: <defaults>
</compile_context>

<pallas_src>
import functools

import jax
import jax.numpy as jnp
from jax.experimental import pallas as pl
from jax.experimental.pallas import tpu as pltpu

SEQ = 2
HIDDEN = 32
INPUT_SIZE = 1


def planenet_kernel(x_ref, w_aug_ref, w_ih_ref, b_ref, w_lin_ref, b_lin_ref,
                    out_ref, rhs_ref):
    """One batch tile of the PlaneNet forward (batch along lanes).

    x_ref     : (SEQ, BB)        f32   input, batch along lanes
    w_aug_ref : (4H, H + 2)      f32   [w_hh | w_ih | b], i/f/o rows pre-scaled by 0.5
    w_ih_ref  : (4H, 1)          f32   pre-scaled w_ih (for the peeled t=0 step)
    b_ref     : (4H, 1)          f32   pre-scaled fused bias (b_ih + b_hh)
    w_lin_ref : (SEQ*H, 1)       f32   linear.weight.T
    b_lin_ref : (1, 1)           f32   linear.bias (SMEM scalar)
    out_ref   : (1, BB)          f32
    rhs_ref   : (H + 2, BB)      f32   VMEM scratch: [h ; x_t ; 1] for the augmented matmul
    """
    H = HIDDEN
    w_aug = w_aug_ref[...]          # (4H, H+2)
    w_ih = w_ih_ref[...]            # (4H, 1)   (0.5-scaled on i/f/o rows)
    b = b_ref[...]                  # (4H, 1)   (0.5-scaled on i/f/o rows)
    w_lin = w_lin_ref[...]          # (SEQ*H, 1)

    def sig(z):
        # sigmoid(z0) with the 0.5*z0 pre-scale already folded into the weights:
        # sigmoid(z0) = 0.5 * (1 + tanh(0.5 * z0)) -> one EUP push instead of two.
        return 0.5 * (1.0 + jnp.tanh(z))

    # ---- t = 0, peeled: h == c == 0, so the recurrent matmul and f*c vanish. ----
    x0 = x_ref[0:1, :]                                     # (1, BB)
    g0 = w_ih * x0 + b                                     # (4H, BB)
    i = sig(g0[0 * H:1 * H, :])
    g = jnp.tanh(g0[2 * H:3 * H, :])
    o = sig(g0[3 * H:4 * H, :])
    c = i * g                                              # (H, BB)
    h = o * jnp.tanh(c)                                    # (H, BB)
    hs = [h]

    # Constant "ones" row feeding the bias column of the augmented matmul.
    rhs_ref[H + 1:H + 2, :] = jnp.ones_like(x0)

    # ---- remaining steps (SEQ is a tiny static constant -> unrolled). ----
    # gates = [w_hh | w_ih | b] @ [h ; x_t ; 1]: one MXU push per step, no VPU
    # broadcast-multiplies; gates are then consumed one (H, BB) slice at a time.
    for t in range(1, SEQ):
        rhs_ref[0:H, :] = h
        rhs_ref[H:H + 1, :] = x_ref[t:t + 1, :]
        gates = jnp.dot(w_aug, rhs_ref[...],
                        preferred_element_type=jnp.float32)  # (4H, BB)
        # PyTorch gate ordering along sublanes: i, f, g, o.
        i = sig(gates[0 * H:1 * H, :])
        f = sig(gates[1 * H:2 * H, :])
        g = jnp.tanh(gates[2 * H:3 * H, :])
        o = sig(gates[3 * H:4 * H, :])
        c = f * c + i * g
        h = o * jnp.tanh(c)
        hs.append(h)

    # linear(32*seq -> 1): sum_t  w_lin[t*H:(t+1)*H] . h_t
    # done as VPU multiply + sublane reduce (keeps the MXU out of an N=1 matmul).
    acc = jnp.zeros_like(x0)                               # (1, BB)
    for t in range(SEQ):
        acc = acc + jnp.sum(w_lin[t * H:(t + 1) * H, :] * hs[t],
                            axis=0, keepdims=True)
    out_ref[...] = acc + b_lin_ref[0, 0]


def prepare_params(params):
    """One-time parameter prep: fuse the two LSTM biases, fold the 0.5
    tanh-based-sigmoid pre-scale into the i/f/o rows, and build the augmented
    [w_hh | w_ih | b] matrix for the recurrent matmul."""
    w_ih, w_hh, b_ih, b_hh, w_lin, b_lin = params
    H = HIDDEN
    scale = jnp.concatenate([
        jnp.full((H, 1), 0.5, jnp.float32),   # i
        jnp.full((H, 1), 0.5, jnp.float32),   # f
        jnp.ones((H, 1), jnp.float32),        # g (tanh gate, unscaled)
        jnp.full((H, 1), 0.5, jnp.float32),   # o
    ], axis=0)                                                  # (4H, 1)
    w_ih_s = w_ih.astype(jnp.float32).reshape(4 * H, 1) * scale  # (4H, 1)
    w_hh_s = w_hh.astype(jnp.float32) * scale                    # (4H, H)
    b_s = (b_ih + b_hh).astype(jnp.float32).reshape(4 * H, 1) * scale
    w_aug = jnp.concatenate([w_hh_s, w_ih_s, b_s], axis=1)       # (4H, H+2)
    w_lin_t = jnp.transpose(w_lin).astype(jnp.float32)           # (SEQ*H, 1)
    b_lin2 = b_lin.astype(jnp.float32).reshape(1, 1)             # (1, 1)
    return (w_aug, w_ih_s, b_s, w_lin_t, b_lin2)


def _select_tile(batch, block_b):
    """Static (trace-time) batch tiling: full-array single block for tiny
    batches; otherwise >= 2 balanced 128-multiple blocks so both v7x
    TensorCores get work (no-op on v5e/v6e)."""
    if batch <= 128:
        return batch, batch
    block_b = max(128, (block_b // 128) * 128)
    half = (batch + 1) // 2
    target = ((half + 127) // 128) * 128
    bb = min(block_b, target)
    b_pad = ((batch + bb - 1) // bb) * bb
    return bb, b_pad


@functools.partial(jax.jit, static_argnames=("block_b",))
def plane_net_forward(x, prepared, block_b=512):
    """x: (B, SEQ, 1) float32, same layout as the PyTorch batch_first LSTM."""
    w_aug, w_ih_s, b_s, w_lin_t, b_lin2 = prepared
    B = x.shape[0]

    # batch along lanes
    x2 = jnp.transpose(x.reshape(B, SEQ)).astype(jnp.float32)   # (SEQ, B)

    bb, b_pad = _select_tile(B, block_b)
    if b_pad != B:
        x2 = jnp.pad(x2, ((0, 0), (0, b_pad - B)))
    nb = b_pad // bb

    out = pl.pallas_call(
        planenet_kernel,
        out_shape=jax.ShapeDtypeStruct((1, b_pad), jnp.float32),
        grid=(nb,),
        in_specs=[
            pl.BlockSpec((SEQ, bb), lambda i: (0, i)),                  # x tile
            pl.BlockSpec((4 * HIDDEN, HIDDEN + 2), lambda i: (0, 0)),   # resident weights
            pl.BlockSpec((4 * HIDDEN, 1), lambda i: (0, 0)),
            pl.BlockSpec((4 * HIDDEN, 1), lambda i: (0, 0)),
            pl.BlockSpec((SEQ * HIDDEN, 1), lambda i: (0, 0)),
            pl.BlockSpec(memory_space=pltpu.MemorySpace.SMEM),          # linear bias scalar
        ],
        out_specs=pl.BlockSpec((1, bb), lambda i: (0, i)),              # lane-dense output
        scratch_shapes=[pltpu.VMEM((HIDDEN + 2, bb), jnp.float32)],     # [h ; x_t ; 1]
        compiler_params=pltpu.CompilerParams(
            dimension_semantics=("parallel",)),                         # 2-TC split on v7x
    )(x2, w_aug, w_ih_s, b_s, w_lin_t, b_lin2)

    return out[0, :B].reshape(B, 1)


def init_params(key):
    """Deterministic init mirroring PyTorch's default U(-1/sqrt(H), 1/sqrt(H))."""
    ks = jax.random.split(key, 6)
    s_lstm = 1.0 / jnp.sqrt(jnp.float32(HIDDEN))
    s_lin = 1.0 / jnp.sqrt(jnp.float32(SEQ * HIDDEN))
    w_ih = jax.random.uniform(ks[0], (4 * HIDDEN, INPUT_SIZE), jnp.float32, -s_lstm, s_lstm)
    w_hh = jax.random.uniform(ks[1], (4 * HIDDEN, HIDDEN), jnp.float32, -s_lstm, s_lstm)
    b_ih = jax.random.uniform(ks[2], (4 * HIDDEN,), jnp.float32, -s_lstm, s_lstm)
    b_hh = jax.random.uniform(ks[3], (4 * HIDDEN,), jnp.float32, -s_lstm, s_lstm)
    w_lin = jax.random.uniform(ks[4], (1, SEQ * HIDDEN), jnp.float32, -s_lin, s_lin)
    b_lin = jax.random.uniform(ks[5], (1,), jnp.float32, -s_lin, s_lin)
    return (w_ih, w_hh, b_ih, b_hh, w_lin, b_lin)


def plane_net_reference(x, params):
    """Pure-JAX reference of the PyTorch forward, for correctness checking."""
    w_ih, w_hh, b_ih, b_hh, w_lin, b_lin = params
    B = x.shape[0]
    h = jnp.zeros((B, HIDDEN), jnp.float32)
    c = jnp.zeros((B, HIDDEN), jnp.float32)
    outs = []
    for t in range(SEQ):
        x_t = x[:, t, :]                                           # (B, 1)
        gates = x_t @ w_ih.T + b_ih + h @ w_hh.T + b_hh            # (B, 4H)
        i = jax.nn.sigmoid(gates[:, 0 * HIDDEN:1 * HIDDEN])
        f = jax.nn.sigmoid(gates[:, 1 * HIDDEN:2 * HIDDEN])
        g = jnp.tanh(gates[:, 2 * HIDDEN:3 * HIDDEN])
        o = jax.nn.sigmoid(gates[:, 3 * HIDDEN:4 * HIDDEN])
        c = f * c + i * g
        h = o * jnp.tanh(c)
        outs.append(h)
    feat = jnp.stack(outs, axis=1).reshape(B, SEQ * HIDDEN)
    return feat @ w_lin.T + b_lin


if __name__ == "__main__":
    key = jax.random.PRNGKey(0)
    pkey, xkey1, xkey2 = jax.random.split(key, 3)
    params = init_params(pkey)
    prepared = prepare_params(params)

    # Small batch: single full-array block, grid of 1.
    B_small = 8
    x_small = jax.random.normal(xkey1, (B_small, SEQ, INPUT_SIZE), jnp.float32)
    out_small = jax.block_until_ready(plane_net_forward(x_small, prepared))
    ref_small = plane_net_reference(x_small, params)
    assert out_small.shape == (B_small, 1)
    assert jnp.allclose(out_small, ref_small, atol=1e-5, rtol=1e-5)

    # Larger, non-multiple batch: padding + two balanced 256-wide blocks
    # (exercises the batch grid / v7x 2-TC path).
    B_big = 300
    x_big = jax.random.normal(xkey2, (B_big, SEQ, INPUT_SIZE), jnp.float32)
    out_big = jax.block_until_ready(plane_net_forward(x_big, prepared, block_b=512))
    ref_big = plane_net_reference(x_big, params)
    assert out_big.shape == (B_big, 1)
    assert jnp.allclose(out_big, ref_big, atol=1e-5, rtol=1e-5)

    print("KERNEL_OK")
</pallas_src>

<mosaic_0001>
module attributes {stable_mosaic.version = 11 : i64} {
  func.func @planenet_kernel(%arg0: i32, %arg1: memref<2x8xf32, #tpu.memory_space<vmem>>, %arg2: memref<128x34xf32, #tpu.memory_space<vmem>>, %arg3: memref<128x1xf32, #tpu.memory_space<vmem>>, %arg4: memref<128x1xf32, #tpu.memory_space<vmem>>, %arg5: memref<64x1xf32, #tpu.memory_space<vmem>>, %arg6: memref<1x1xf32, #tpu.memory_space<smem>>, %arg7: memref<1x8xf32, #tpu.memory_space<vmem>>, %arg8: memref<34x8xf32, #tpu.memory_space<vmem>>) attributes {dimension_semantics = [#tpu.dimension_semantics<parallel>], iteration_bounds = array<i64: 1>, scalar_prefetch = 0 : i64, scratch_operands = 1 : i64, tpu.core_type = #tpu.core_type<tc>, window_params = [{transform_indices = @transform_0, window_bounds = array<i64: 2, 8>}, {pipeline_mode = #tpu.pipeline_mode<synchronous>, transform_indices = @transform_1, window_bounds = array<i64: 128, 34>}, {pipeline_mode = #tpu.pipeline_mode<synchronous>, transform_indices = @transform_2, window_bounds = array<i64: 128, 1>}, {pipeline_mode = #tpu.pipeline_mode<synchronous>, transform_indices = @transform_3, window_bounds = array<i64: 128, 1>}, {pipeline_mode = #tpu.pipeline_mode<synchronous>, transform_indices = @transform_4, window_bounds = array<i64: 64, 1>}, {transform_indices = @transform_5, window_bounds = array<i64: 1, 1>}, {transform_indices = @transform_6, window_bounds = array<i64: 1, 8>}]} {
    %c0 = arith.constant 0 : index
    %c0_0 = arith.constant 0 : index
    %0 = vector.load %arg2[%c0, %c0_0] : memref<128x34xf32, #tpu.memory_space<vmem>>, vector<128x34xf32>
    %c0_1 = arith.constant 0 : index
    %c0_2 = arith.constant 0 : index
    %1 = vector.load %arg3[%c0_1, %c0_2] : memref<128x1xf32, #tpu.memory_space<vmem>>, vector<128x1xf32>
    %c0_3 = arith.constant 0 : index
    %c0_4 = arith.constant 0 : index
    %2 = vector.load %arg4[%c0_3, %c0_4] : memref<128x1xf32, #tpu.memory_space<vmem>>, vector<128x1xf32>
    %c0_5 = arith.constant 0 : index
    %c0_6 = arith.constant 0 : index
    %3 = vector.load %arg5[%c0_5, %c0_6] : memref<64x1xf32, #tpu.memory_space<vmem>>, vector<64x1xf32>
    %c0_7 = arith.constant 0 : index
    %c0_8 = arith.constant 0 : index
    %4 = vector.load %arg1[%c0_7, %c0_8] : memref<2x8xf32, #tpu.memory_space<vmem>>, vector<1x8xf32>
    %5 = vector.broadcast %1 : vector<128x1xf32> to vector<128x8xf32>
    %6 = vector.broadcast %4 : vector<1x8xf32> to vector<128x8xf32>
    %7 = arith.mulf %5, %6 : vector<128x8xf32>
    %8 = vector.broadcast %2 : vector<128x1xf32> to vector<128x8xf32>
    %9 = arith.addf %7, %8 : vector<128x8xf32>
    %10 = vector.extract_strided_slice %9 {offsets = [0, 0], sizes = [32, 8], strides = [1, 1]} : vector<128x8xf32> to vector<32x8xf32>
    %11 = math.tanh %10 : vector<32x8xf32>
    %cst = arith.constant 1.000000e+00 : f32
    %12 = vector.broadcast %cst : f32 to vector<32x8xf32>
    %13 = arith.addf %12, %11 : vector<32x8xf32>
    %cst_9 = arith.constant 5.000000e-01 : f32
    %14 = vector.broadcast %cst_9 : f32 to vector<32x8xf32>
    %15 = arith.mulf %14, %13 : vector<32x8xf32>
    %16 = vector.extract_strided_slice %9 {offsets = [64, 0], sizes = [32, 8], strides = [1, 1]} : vector<128x8xf32> to vector<32x8xf32>
    %17 = math.tanh %16 : vector<32x8xf32>
    %18 = vector.extract_strided_slice %9 {offsets = [96, 0], sizes = [32, 8], strides = [1, 1]} : vector<128x8xf32> to vector<32x8xf32>
    %19 = math.tanh %18 : vector<32x8xf32>
    %cst_10 = arith.constant 1.000000e+00 : f32
    %20 = vector.broadcast %cst_10 : f32 to vector<32x8xf32>
    %21 = arith.addf %20, %19 : vector<32x8xf32>
    %cst_11 = arith.constant 5.000000e-01 : f32
    %22 = vector.broadcast %cst_11 : f32 to vector<32x8xf32>
    %23 = arith.mulf %22, %21 : vector<32x8xf32>
    %24 = arith.mulf %15, %17 : vector<32x8xf32>
    %25 = math.tanh %24 : vector<32x8xf32>
    %26 = arith.mulf %23, %25 : vector<32x8xf32>
    %cst_12 = arith.constant 1.000000e+00 : f32
    %27 = vector.broadcast %cst_12 : f32 to vector<1x8xf32>
    %c33 = arith.constant 33 : index
    %c0_13 = arith.constant 0 : index
    %28 = vector.load %arg8[%c33, %c0_13] : memref<34x8xf32, #tpu.memory_space<vmem>>, vector<1x8xf32>
    tpu.vector_store %arg8[%c33, %c0_13], %27 {strides = array<i32>} : memref<34x8xf32, #tpu.memory_space<vmem>>, vector<1x8xf32>,
    %c0_14 = arith.constant 0 : index
    %c0_15 = arith.constant 0 : index
    %29 = vector.load %arg8[%c0_14, %c0_15] : memref<34x8xf32, #tpu.memory_space<vmem>>, vector<32x8xf32>
    tpu.vector_store %arg8[%c0_14, %c0_15], %26 {strides = array<i32>} : memref<34x8xf32, #tpu.memory_space<vmem>>, vector<32x8xf32>,
    %c1 = arith.constant 1 : index
    %c0_16 = arith.constant 0 : index
    %30 = vector.load %arg1[%c1, %c0_16] : memref<2x8xf32, #tpu.memory_space<vmem>>, vector<1x8xf32>
    %c32 = arith.constant 32 : index
    %c0_17 = arith.constant 0 : index
    %31 = vector.load %arg8[%c32, %c0_17] : memref<34x8xf32, #tpu.memory_space<vmem>>, vector<1x8xf32>
    tpu.vector_store %arg8[%c32, %c0_17], %30 {strides = array<i32>} : memref<34x8xf32, #tpu.memory_space<vmem>>, vector<1x8xf32>,
    %c0_18 = arith.constant 0 : index
    %c0_19 = arith.constant 0 : index
    %32 = vector.load %arg8[%c0_18, %c0_19] : memref<34x8xf32, #tpu.memory_space<vmem>>, vector<34x8xf32>
    %cst_20 = arith.constant dense<0.000000e+00> : vector<128x8xf32>
    %33 = tpu.matmul %0, %32, %cst_20 {dimension_numbers = #tpu.dot_dimension_numbers<[1], [0], [0], [1], [0, 0, 1, 1], [], []>} : vector<128x34xf32>, vector<34x8xf32>, vector<128x8xf32> -> vector<128x8xf32>
    %34 = vector.extract_strided_slice %33 {offsets = [0, 0], sizes = [32, 8], strides = [1, 1]} : vector<128x8xf32> to vector<32x8xf32>
    %35 = math.tanh %34 : vector<32x8xf32>
    %cst_21 = arith.constant 1.000000e+00 : f32
    %36 = vector.broadcast %cst_21 : f32 to vector<32x8xf32>
    %37 = arith.addf %36, %35 : vector<32x8xf32>
    %cst_22 = arith.constant 5.000000e-01 : f32
    %38 = vector.broadcast %cst_22 : f32 to vector<32x8xf32>
    %39 = arith.mulf %38, %37 : vector<32x8xf32>
    %40 = vector.extract_strided_slice %33 {offsets = [32, 0], sizes = [32, 8], strides = [1, 1]} : vector<128x8xf32> to vector<32x8xf32>
    %41 = math.tanh %40 : vector<32x8xf32>
    %cst_23 = arith.constant 1.000000e+00 : f32
    %42 = vector.broadcast %cst_23 : f32 to vector<32x8xf32>
    %43 = arith.addf %42, %41 : vector<32x8xf32>
    %cst_24 = arith.constant 5.000000e-01 : f32
    %44 = vector.broadcast %cst_24 : f32 to vector<32x8xf32>
    %45 = arith.mulf %44, %43 : vector<32x8xf32>
    %46 = vector.extract_strided_slice %33 {offsets = [64, 0], sizes = [32, 8], strides = [1, 1]} : vector<128x8xf32> to vector<32x8xf32>
    %47 = math.tanh %46 : vector<32x8xf32>
    %48 = vector.extract_strided_slice %33 {offsets = [96, 0], sizes = [32, 8], strides = [1, 1]} : vector<128x8xf32> to vector<32x8xf32>
    %49 = math.tanh %48 : vector<32x8xf32>
    %cst_25 = arith.constant 1.000000e+00 : f32
    %50 = vector.broadcast %cst_25 : f32 to vector<32x8xf32>
    %51 = arith.addf %50, %49 : vector<32x8xf32>
    %cst_26 = arith.constant 5.000000e-01 : f32
    %52 = vector.broadcast %cst_26 : f32 to vector<32x8xf32>
    %53 = arith.mulf %52, %51 : vector<32x8xf32>
    %54 = arith.mulf %45, %24 : vector<32x8xf32>
    %55 = arith.mulf %39, %47 : vector<32x8xf32>
    %56 = arith.addf %54, %55 : vector<32x8xf32>
    %57 = math.tanh %56 : vector<32x8xf32>
    %58 = arith.mulf %53, %57 : vector<32x8xf32>
    %cst_27 = arith.constant 0.000000e+00 : f32
    %59 = vector.broadcast %cst_27 : f32 to vector<1x8xf32>
    %60 = vector.extract_strided_slice %3 {offsets = [0, 0], sizes = [32, 1], strides = [1, 1]} : vector<64x1xf32> to vector<32x1xf32>
    %61 = vector.broadcast %60 : vector<32x1xf32> to vector<32x8xf32>
    %62 = arith.mulf %61, %26 : vector<32x8xf32>
    %cst_28 = arith.constant dense<0.000000e+00> : vector<8xf32>
    %63 = vector.multi_reduction <add>, %62, %cst_28 [0] : vector<32x8xf32> to vector<8xf32>
    %64 = vector.shape_cast %63 : vector<8xf32> to vector<1x8xf32>
    %65 = arith.addf %59, %64 : vector<1x8xf32>
    %66 = vector.extract_strided_slice %3 {offsets = [32, 0], sizes = [32, 1], strides = [1, 1]} : vector<64x1xf32> to vector<32x1xf32>
    %67 = vector.broadcast %66 : vector<32x1xf32> to vector<32x8xf32>
    %68 = arith.mulf %67, %58 : vector<32x8xf32>
    %cst_29 = arith.constant dense<0.000000e+00> : vector<8xf32>
    %69 = vector.multi_reduction <add>, %68, %cst_29 [0] : vector<32x8xf32> to vector<8xf32>
    %70 = vector.shape_cast %69 : vector<8xf32> to vector<1x8xf32>
    %71 = arith.addf %65, %70 : vector<1x8xf32>
    %c0_30 = arith.constant 0 : index
    %c0_31 = arith.constant 0 : index
    %72 = memref.load %arg6[%c0_30, %c0_31] : memref<1x1xf32, #tpu.memory_space<smem>>
    %73 = vector.broadcast %72 : f32 to vector<1x8xf32>
    %74 = arith.addf %71, %73 : vector<1x8xf32>
    %c0_32 = arith.constant 0 : index
    %c0_33 = arith.constant 0 : index
    %75 = vector.load %arg7[%c0_32, %c0_33] : memref<1x8xf32, #tpu.memory_space<vmem>>, vector<1x8xf32>
    tpu.vector_store %arg7[%c0_32, %c0_33], %74 {strides = array<i32>} : memref<1x8xf32, #tpu.memory_space<vmem>>, vector<1x8xf32>,
    return
  }
  func.func @transform_0(%arg0: i32) -> (i32, i32) {
    %c0_i32 = arith.constant 0 : i32
    %c0_i32_0 = arith.constant 0 : i32
    return %c0_i32, %arg0 : i32, i32
  }
  func.func @transform_1(%arg0: i32) -> (i32, i32) {
    %c0_i32 = arith.constant 0 : i32
    %c0_i32_0 = arith.constant 0 : i32
    %c0_i32_1 = arith.constant 0 : i32
    return %c0_i32, %c0_i32_0 : i32, i32
  }
  func.func @transform_2(%arg0: i32) -> (i32, i32) {
    %c0_i32 = arith.constant 0 : i32
    %c0_i32_0 = arith.constant 0 : i32
    %c0_i32_1 = arith.constant 0 : i32
    return %c0_i32, %c0_i32_0 : i32, i32
  }
  func.func @transform_3(%arg0: i32) -> (i32, i32) {
    %c0_i32 = arith.constant 0 : i32
    %c0_i32_0 = arith.constant 0 : i32
    %c0_i32_1 = arith.constant 0 : i32
    return %c0_i32, %c0_i32_0 : i32, i32
  }
  func.func @transform_4(%arg0: i32) -> (i32, i32) {
    %c0_i32 = arith.constant 0 : i32
    %c0_i32_0 = arith.constant 0 : i32
    %c0_i32_1 = arith.constant 0 : i32
    return %c0_i32, %c0_i32_0 : i32, i32
  }
  func.func @transform_5(%arg0: i32) -> (i32, i32) {
    %c0_i32 = arith.constant 0 : i32
    %c0_i32_0 = arith.constant 0 : i32
    %c0_i32_1 = arith.constant 0 : i32
    return %c0_i32, %c0_i32_0 : i32, i32
  }
  func.func @transform_6(%arg0: i32) -> (i32, i32) {
    %c0_i32 = arith.constant 0 : i32
    %c0_i32_0 = arith.constant 0 : i32
    return %c0_i32, %arg0 : i32, i32
  }
}

</mosaic_0001>

<bundles_post_ra>
// kernel: plane_net_forward.1
= control target key start
LH: loop header
LB: loop body
LE: loop exit
PB: predicated region body
PF: predicated region fallthrough
CT: control target
= control target key end

     0   :  { %v816_v2 = vmov 0   ;;  %s1073_s0 = inlined_call_operand.vmem [shape: f32[2,8], index: 0, kind: input, shape index: {}]   ;;  %s1074_s1 = inlined_call_operand.vmem [shape: f32[128,34], index: 1, kind: input, shape index: {}]   ;;  %s1075_s2 = inlined_call_operand.vmem [shape: f32[128,1], index: 2, kind: input, shape index: {}]   ;;  %s1076_s3 = inlined_call_operand.vmem [shape: f32[128,1], index: 3, kind: input, shape index: {}]   ;;  %s1077_s4 = inlined_call_operand.vmem [shape: f32[64,1], index: 4, kind: input, shape index: {}]   ;;  %s1078_s5 = inlined_call_operand.<no memory space> [shape: f32[1,1], index: 5, kind: input, shape index: {}]   ;;  %s1079_s6 = inlined_call_operand.hbm [shape: f32[1,8], index: 6, kind: output, shape index: {}]  }
   0x1   :  { %v53_v0 = vld [vmem:[%s1076_s3] sm:$0xff]  ;;  %719 = vset.pattern.permute.xlu1 %v816_v2  ;;  %718 = vset.pattern.permute.xlu0 %v816_v2  ;;  %v54_v3 = vld [vmem:[%s1076_s3 + $0x8] sm:$0xff]  ;;  %v44_v5 = vld [vmem:[%s1075_s2 + $0x18] sm:$0xff] }
   0x2   :  { %v41_v1 = vld [vmem:[%s1075_s2] sm:$0xff]  ;;  %152 = vperm.xlu1 %719, %v53_v0   ;;  %v42_v4 = vld [vmem:[%s1075_s2 + $0x8] sm:$0xff]  ;;  %v43_v6 = vld [vmem:[%s1075_s2 + $0x10] sm:$0xff] }
   0x3   :  { %76 = vperm.xlu0 %718, %v41_v1   ;;  %v46_v7 = vld [vmem:[%s1075_s2 + $0x48] sm:$0xff]  ;;  %v45_v8 = vld [vmem:[%s1075_s2 + $0x40] sm:$0xff] }
   0x6   :  { %157 = vperm.xlu1 %719, %v54_v3  }
   0x7   :  { %81 = vperm.xlu0 %718, %v42_v4  }
   0xa   :  { %91 = vperm.xlu1 %719, %v44_v5  }
   0xb   :  { %86 = vperm.xlu0 %718, %v43_v6  }
   0xc   :  { %12 = vsyncpa [#allocation5], 0  ;;  %v56_v9 = vld [vmem:[%s1076_s3 + $0x18] sm:$0xff]  ;;  %v55_v10 = vld [vmem:[%s1076_s3 + $0x10] sm:$0xff]  ;;  %vm262_vm0 = vcmask 57344   ;;  %v817_v34 = vmov 1.0  }
   0xd   :  { %v58_v11 = vld [vmem:[%s1076_s3 + $0x48] sm:$0xff]  ;;  %v57_v12 = vld [vmem:[%s1076_s3 + $0x40] sm:$0xff]  ;;  %v48_v13 = vld [vmem:[%s1075_s2 + $0x58] sm:$0xff]  ;;  %263 = vst.msk [vmem:[#allocation2 + $0x21] sm:$0x1] %vm262_vm0, %v817_v34  ;;  %vm276_vm1 = vcmask 277504  }
   0xe   :  { %101 = vperm.xlu1 %719, %v46_v7   ;;  %v47_v14 = vld [vmem:[%s1075_s2 + $0x50] sm:$0xff]  ;;  %v60_v15 = vld [vmem:[%s1076_s3 + $0x58] sm:$0xff]  ;;  %v50_v17 = vld [vmem:[%s1075_s2 + $0x68] sm:$0xff]  ;;  %vm264_vm2 = vcmask 64512   ;;  %vm325_vm3 = vcmask 1041408   ;;  %s818_s18 = smov [#allocation4]  }
   0xf   :  { %96 = vperm.xlu0 %718, %v45_v8   ;;  %v59_v16 = vld [vmem:[%s1076_s3 + $0x50] sm:$0xff]  ;;  %v49_v18 = vld [vmem:[%s1075_s2 + $0x60] sm:$0xff]  ;;  %v62_v19 = vld [vmem:[%s1076_s3 + $0x68] sm:$0xff]  ;;  %s620_s19 = sshll.u32 %s818_s18, 4  ;;  %s621_s19 = int_to_ptr.vmem [resolvable:$true] %s620_s19 }
  0x10   :  { %v61_v20 = vld [vmem:[%s1076_s3 + $0x60] sm:$0xff]  ;;  %v52_v21 = vld [vmem:[%s1075_s2 + $0x78] sm:$0xff]  ;;  %v51_v22 = vld [vmem:[%s1075_s2 + $0x70] sm:$0xff]  ;;  %s792_s20 = scalar_lea.vmem %s621_s19, 16  ;;  %s796_s21 = scalar_lea.vmem %s621_s19, 32 }
  0x11   :  { %v64_v23 = vld [vmem:[%s1076_s3 + $0x78] sm:$0xff]  ;;  %v63_v24 = vld [vmem:[%s1076_s3 + $0x70] sm:$0xff]  ;;  %v66_v25 = vld [vmem:[%s1077_s4 + $0x8] sm:$0xff]  ;;  %p793_p0 = scmp.ne.s32.totalorder %s621_s19, %s792_s20  ;;  %p797_p1 = scmp.lt.s32.totalorder %s621_s19, %s621_s19 }
  0x12   :  { %167 = vperm.xlu1 %719, %v56_v9   ;;  %v65_v26 = vld [vmem:[%s1077_s4] sm:$0xff]  ;;  %v70_v27 = vld [vmem:[%s1077_s4 + $0x28] sm:$0xff]  ;;  %v71_v29 = vld [vmem:[%s1077_s4 + $0x30] sm:$0xff]  ;;  %p798_p2 = scmp.lt.s32.totalorder %s796_s21, %s792_s20 }
  0x13   :  { %162 = vperm.xlu0 %718, %v55_v10   ;;  %v69_v28 = vld [vmem:[%s1077_s4 + $0x20] sm:$0xff]  ;;  %v67_v30 = vld [vmem:[%s1077_s4 + $0x10] sm:$0xff]  ;;  %v72_v31 = vld [vmem:[%s1077_s4 + $0x38] sm:$0xff] }
  0x14   :  { %v68_v32 = vld [vmem:[%s1077_s4 + $0x18] sm:$0xff]  ;;  %v269_v33 = vld [vmem:[%s1073_s0 + $0x1] sm:$0x1]  ;;  %v628_v43 = vld [vmem:[%s1073_s0] ss:$0 sm:$0xff]  ;;  %p799_p3 = por %p798_p2, %p797_p1 }
  0x15   :  { %270 = vst.msk [vmem:[#allocation2 + $0x20] sm:$0x1] %vm262_vm0, %v269_v33  ;;  %v25_v35 = vld [vmem:[%s1074_s1] sm:$0xff] }
  0x16   :  { %177 = vperm.xlu1 %719, %v58_v11   ;;  %677 = vmatprep.mubr.msk.f32.mxu0 %vm276_vm1, %v25_v35  ;;  %v33_v36 = vld [vmem:[%s1074_s1 + $0x40] sm:$0xff]  ;;  %p800_p4 = pnand %p799_p3, %p793_p0 }
  0x17   :  { %172 = vperm.xlu0 %718, %v57_v12   ;;  %689 = vmatprep.mubr.msk.f32.mxu1 %vm276_vm1, %v33_v36 }
  0x1a   :  { %111 = vperm.xlu1 %719, %v48_v13  }
  0x1b   :  { %106 = vperm.xlu0 %718, %v47_v14  }
  0x1e   :  { %187 = vperm.xlu1 %719, %v60_v15  }
  0x1f   :  { %182 = vperm.xlu0 %718, %v59_v16  }
  0x22   :  { %121 = vperm.xlu1 %719, %v50_v17  }
  0x23   :  { %116 = vperm.xlu0 %718, %v49_v18  }
  0x26   :  { %197 = vperm.xlu1 %719, %v62_v19  }
  0x27   :  { %192 = vperm.xlu0 %718, %v61_v20  }
  0x2a   :  { %131 = vperm.xlu1 %719, %v52_v21  }
  0x2b   :  { %126 = vperm.xlu0 %718, %v51_v22  }
  0x2e   :  { %207 = vperm.xlu1 %719, %v64_v23  }
  0x2f   :  { %202 = vperm.xlu0 %718, %v63_v24  }
  0x32   :  { %541 = vperm.xlu1 %719, %v66_v25  }
  0x33   :  { %536 = vperm.xlu0 %718, %v65_v26  }
  0x36   :  { %579 = vperm.xlu1 %719, %v70_v27  }
  0x37   :  { %574 = vperm.xlu0 %718, %v69_v28  }
  0x3a   :  { %584 = vperm.xlu1 %719, %v71_v29  }
  0x3b   :  { %546 = vperm.xlu0 %718, %v67_v30  }
  0x3e   :  { %589 = vperm.xlu1 %719, %v72_v31  }
  0x3f   :  { %551 = vperm.xlu0 %718, %v68_v32  }
  0x81   :  { %v153_v37 = vpop.permute.xlu1 %152 }
  0x82   :  { %v77_v38 = vpop.permute.xlu0 %76 }
  0x83   :  { %v138_v47 = vmul.f32 %v628_v43, %v77_v38 }
  0x85   :  { %v158_v39 = vpop.permute.xlu1 %157  ;;  %v210_v51 = vadd.f32 %v153_v37, %v138_v47 }
  0x86   :  { %v82_v40 = vpop.permute.xlu0 %81 }
  0x87   :  { %v139_v44 = vmul.f32 %v628_v43, %v82_v40 }
  0x89   :  { %v92_v41 = vpop.permute.xlu1 %91  ;;  %v211_v48 = vadd.f32 %v158_v39, %v139_v44 }
  0x8a   :  { %v87_v42 = vpop.permute.xlu0 %86  ;;  %v141_v56 = vmul.f32 %v628_v43, %v92_v41 }
  0x8b   :  { %720 = vtanh.f32 %v211_v48  ;;  %v140_v58 = vmul.f32 %v628_v43, %v87_v42 }
  0x8c   :  { %722 = vtanh.f32 %v210_v51 }
  0x8d   :  { %v102_v45 = vpop.permute.xlu1 %101 }
  0x8e   :  { %v97_v46 = vpop.permute.xlu0 %96  ;;  %v143_v52 = vmul.f32 %v628_v43, %v102_v45 }
  0x8f   :  { %v142_v55 = vmul.f32 %v628_v43, %v97_v46 }
  0x91   :  { %v168_v49 = vpop.permute.xlu1 %167 }
  0x92   :  { %v163_v50 = vpop.permute.xlu0 %162  ;;  %v213_v60 = vadd.f32 %v168_v49, %v141_v56 }
  0x93   :  { %v212_v63 = vadd.f32 %v163_v50, %v140_v58 }
  0x95   :  { %v178_v53 = vpop.permute.xlu1 %177  ;;  %v721_v4 = vpop.eup %720 }
  0x96   :  { %v173_v54 = vpop.permute.xlu0 %172  ;;  %v215_v57 = vadd.f32 %v178_v53, %v143_v52  ;;  %v723_v6 = vpop.eup %722  ;;  %v227_v10 = vadd.f32 1.0, %v721_v4 }
  0x97   :  { %v214_v59 = vadd.f32 %v173_v54, %v142_v55  ;;  %v226_v11 = vadd.f32 1.0, %v723_v6 }
  0x98   :  { %724 = vtanh.f32 %v215_v57  ;;  %v231_v18 = vmul.f32 0.5, %v227_v10 }
  0x99   :  { %v112_v61 = vpop.permute.xlu1 %111  ;;  %726 = vtanh.f32 %v214_v59  ;;  %v230_v22 = vmul.f32 0.5, %v226_v11 }
  0x9a   :  { %v107_v62 = vpop.permute.xlu0 %106  ;;  %728 = vtanh.f32 %v213_v60  ;;  %v145_v0 = vmul.f32 %v628_v43, %v112_v61 }
  0x9b   :  { %730 = vtanh.f32 %v212_v63  ;;  %v144_v3 = vmul.f32 %v628_v43, %v107_v62 }
  0x9d   :  { %v188_v1 = vpop.permute.xlu1 %187 }
  0x9e   :  { %v183_v2 = vpop.permute.xlu0 %182  ;;  %v217_v5 = vadd.f32 %v188_v1, %v145_v0 }
  0x9f   :  { %v216_v7 = vadd.f32 %v183_v2, %v144_v3 }
  0xa0   :  { %732 = vtanh.f32 %v217_v5 }
  0xa1   :  { %v122_v8 = vpop.permute.xlu1 %121  ;;  %734 = vtanh.f32 %v216_v7 }
  0xa2   :  { %v117_v9 = vpop.permute.xlu0 %116  ;;  %v147_v12 = vmul.f32 %v628_v43, %v122_v8  ;;  %v725_v14 = vpop.eup %724 }
  0xa3   :  { %v146_v13 = vmul.f32 %v628_v43, %v117_v9  ;;  %v727_v17 = vpop.eup %726  ;;  %v966_v24 = vmul.f32 %v725_v14, %v231_v18 }
  0xa4   :  { %v729_v21 = vpop.eup %728  ;;  %v968_v25 = vmul.f32 %v727_v17, %v230_v22  ;;  %v34_v22 = vld [vmem:[%s1074_s1 + $0x48] sm:$0xff] }
  0xa5   :  { %v198_v15 = vpop.permute.xlu1 %197  ;;  %v731_v23 = vpop.eup %730  ;;  %v229_v28 = vadd.f32 1.0, %v729_v21  ;;  %v26_v21 = vld [vmem:[%s1074_s1 + $0x8] sm:$0xff] }
  0xa6   :  { %v193_v16 = vpop.permute.xlu0 %192  ;;  %v219_v19 = vadd.f32 %v198_v15, %v147_v12  ;;  %v228_v29 = vadd.f32 1.0, %v731_v23  ;;  %v27_v23 = vld [vmem:[%s1074_s1 + $0x10] sm:$0xff] }
  0xa7   :  { %v218_v20 = vadd.f32 %v193_v16, %v146_v13  ;;  %v233_v36 = vmul.f32 0.5, %v229_v28  ;;  %v36_v28 = vld [vmem:[%s1074_s1 + $0x58] sm:$0xff] }
  0xa8   :  { %736 = vtanh.f32 %v219_v19  ;;  %v232_v39 = vmul.f32 0.5, %v228_v29  ;;  %v29_v29 = vld [vmem:[%s1074_s1 + $0x20] sm:$0xff] }
  0xa9   :  { %738 = vtanh.f32 %v218_v20  ;;  %v132_v26 = vpop.permute.xlu1 %131  ;;  %v275_v20 = vld [vmem:[#allocation2 + $0x20] sm:$0x3] }
  0xaa   :  { %v127_v27 = vpop.permute.xlu0 %126  ;;  %v149_v30 = vmul.f32 %v628_v43, %v132_v26  ;;  %740 = vtanh.f32 %v966_v24  ;;  %v733_v32 = vpop.eup %732  ;;  %v35_v26 = vld [vmem:[%s1074_s1 + $0x50] sm:$0xff] }
  0xab   :  { %v148_v31 = vmul.f32 %v628_v43, %v127_v27  ;;  %742 = vtanh.f32 %v968_v25  ;;  %v735_v35 = vpop.eup %734  ;;  %v972_v40 = vmul.f32 %v733_v32, %v233_v36  ;;  %v28_v27 = vld [vmem:[%s1074_s1 + $0x18] sm:$0xff]  ;;  %v38_v32 = vld [vmem:[%s1074_s1 + $0x68] sm:$0xff] }
  0xac   :  { %v974_v41 = vmul.f32 %v735_v35, %v232_v39  ;;  %v32_v35 = vld [vmem:[%s1074_s1 + $0x38] sm:$0xff] }
  0xad   :  { %v208_v33 = vpop.permute.xlu1 %207  ;;  %v40_v36 = vld [vmem:[%s1074_s1 + $0x78] sm:$0xff] }
  0xae   :  { %v203_v34 = vpop.permute.xlu0 %202  ;;  %v221_v37 = vadd.f32 %v208_v33, %v149_v30  ;;  %v37_v30 = vld [vmem:[%s1074_s1 + $0x60] sm:$0xff]  ;;  %v31_v33 = vld [vmem:[%s1074_s1 + $0x30] sm:$0xff] }
  0xaf   :  { %v220_v38 = vadd.f32 %v203_v34, %v148_v31  ;;  %v30_v31 = vld [vmem:[%s1074_s1 + $0x28] sm:$0xff]  ;;  %v39_v34 = vld [vmem:[%s1074_s1 + $0x70] sm:$0xff] }
  0xb0   :  { %744 = vtanh.f32 %v221_v37 }
  0xb1   :  { %746 = vtanh.f32 %v220_v38  ;;  %v542_v53 = vpop.permute.xlu1 %541 }
  0xb2   :  { %v537_v42 = vpop.permute.xlu0 %536  ;;  %v737_v43 = vpop.eup %736  ;;  %748 = vtanh.f32 %v972_v40 }
  0xb3   :  { %v739_v44 = vpop.eup %738  ;;  %v243_v45 = vadd.f32 1.0, %v737_v43  ;;  %750 = vtanh.f32 %v974_v41 }
  0xb4   :  { %v242_v46 = vadd.f32 1.0, %v739_v44  ;;  %v741_v49 = vpop.eup %740 }
  0xb5   :  { %v247_v47 = vmul.f32 0.5, %v243_v45  ;;  %v743_v51 = vpop.eup %742 }
  0xb6   :  { %v977_v48 = vpop.permute.xlu0 %574  ;;  %v246_v50 = vmul.f32 0.5, %v242_v46 }
  0xb7   :  { %v259_v52 = vmul.f32 %v741_v49, %v247_v47 }
  0xb8   :  { %v258_v54 = vmul.f32 %v743_v51, %v246_v50 }
  0xb9   :  { %266 = vst.msk [vmem:[#allocation2 + $0x8] sm:$0xff] %vm264_vm2, %v259_v52  ;;  %v555_v55 = vmul.f32 %v542_v53, %v259_v52 }
  0xba   :  { %v745_v56 = vpop.eup %744  ;;  %265 = vst.msk [vmem:[#allocation2] sm:$0xff] %vm264_vm2, %v258_v54  ;;  %v554_v57 = vmul.f32 %v537_v42, %v258_v54  ;;  %v547_v61 = vpop.permute.xlu0 %546 }
  0xbb   :  { %v747_v58 = vpop.eup %746  ;;  %v245_v59 = vadd.f32 1.0, %v745_v56  ;;  %v559_v60 = vsel %vm264_vm2, %v555_v55, 0.0 }
  0xbc   :  { %v244_v62 = vadd.f32 1.0, %v747_v58  ;;  %v558_v63 = vsel %vm264_vm2, %v554_v57, 0.0  ;;  %v749_v2 = vpop.eup %748 }
  0xbd   :  { %v249_v0 = vmul.f32 0.5, %v245_v59  ;;  %v560_v1 = vadd.f32 %v559_v60, %v558_v63  ;;  %v751_v4 = vpop.eup %750 }
  0xbe   :  { %v248_v3 = vmul.f32 0.5, %v244_v62  ;;  %v552_v8 = vpop.permute.xlu0 %551 }
  0xbf   :  { %v261_v5 = vmul.f32 %v749_v2, %v249_v0 }
  0xc0   :  { %v260_v6 = vmul.f32 %v751_v4, %v248_v3  ;;  %v272_v7 = vld [vmem:[#allocation2 + $0x8] sm:$0xff] }
  0xc1   :  { %268 = vst.msk [vmem:[#allocation2 + $0x18] sm:$0xff] %vm264_vm2, %v261_v5  ;;  %v271_v9 = vld [vmem:[#allocation2] sm:$0xff]  ;;  %v557_v11 = vmul.f32 %v552_v8, %v261_v5 }
  0xc2   :  { %267 = vst.msk [vmem:[#allocation2 + $0x10] sm:$0xff] %vm264_vm2, %v260_v6  ;;  %v556_v10 = vmul.f32 %v547_v61, %v260_v6  ;;  %v701_v12 = vpack.c.bf16 %v272_v7, %v271_v9 }
  0xc3   :  { %v563_v15 = vsel %vm264_vm2, %v557_v11, 0.0 }
  0xc4   :  { %v561_v13 = vsel %vm264_vm2, %v556_v10, 0.0  ;;  %702 = vmatprep.subr.bf16.mxu0 %v701_v12  ;;  %709 = vmatprep.subr.bf16.mxu1 %v701_v12 }
  0xc5   :  { %v562_v14 = vadd.f32 %v561_v13, %v560_v1  ;;  %704 = vmatpush3.bf16.msra.mxu0 %v701_v12  ;;  %712 = vmatpush3.bf16.msra.mxu1 %v701_v12 }
  0xc7   :  { %v988_v16 = vadd.f32 %v563_v15, %v562_v14 }
  0xc8   :  { %v274_v17 = vld [vmem:[#allocation2 + $0x18] sm:$0xff] }
  0xc9   :  { %v273_v18 = vld [vmem:[#allocation2 + $0x10] sm:$0xff] }
  0xca   :  { %v705_v19 = vpack.c.bf16 %v274_v17, %v273_v18 }
  0xcc   :  { %706 = vmatprep.subr.bf16.mxu0 %v705_v19  ;;  %710 = vmatprep.subr.bf16.mxu1 %v705_v19 }
  0xcd   :  { %708 = vmatpush3.bf16.msra.mxu0 %v705_v19  ;;  %713 = vmatpush3.bf16.msra.mxu1 %v705_v19 }
  0xce   :  { %675 = vmatprep.subr.msk.mxu0 %vm325_vm3, %v275_v20  ;;  %711 = vmatprep.subr.msk.mxu1 %vm325_vm3, %v275_v20 }
  0xd1   :  { %676 = vmatpush3.msk.msra.mxu0 %vm325_vm3, %v275_v20  ;;  %714 = vmatpush3.msk.msra.mxu1 %vm325_vm3, %v275_v20 }
  0xd2   :  { %678 = vmatmul.mubr.msk.f32.vlgmr.msra.gmra.mrb[0].mxu0 %vm276_vm1, %v26_v21  ;;  %690 = vmatmul.mubr.msk.f32.vlgmr.msra.gmra.mrb[0].mxu1 %vm276_vm1, %v34_v22 }
  0xd3   :  { %680 = vmatprep.mubr.msk.f32.mxu0 %vm276_vm1, %v27_v23  ;;  %692 = vmatprep.mubr.msk.f32.mxu1 %vm276_vm1, %v35_v26 }
  0xd6   :  { %681 = vmatmul.mubr.msk.f32.gmra.mrb[2].mxu0 %vm276_vm1, %v28_v27  ;;  %693 = vmatmul.mubr.msk.f32.gmra.mrb[2].mxu1 %vm276_vm1, %v36_v28 }
  0xd7   :  { %683 = vmatprep.mubr.msk.f32.mxu0 %vm276_vm1, %v29_v29  ;;  %695 = vmatprep.mubr.msk.f32.mxu1 %vm276_vm1, %v37_v30 }
  0xda   :  { %684 = vmatmul.mubr.msk.f32.gmra.mrb[4].mxu0 %vm276_vm1, %v30_v31  ;;  %696 = vmatmul.mubr.msk.f32.gmra.mrb[4].mxu1 %vm276_vm1, %v38_v32 }
  0xdb   :  { %686 = vmatprep.mubr.msk.f32.mxu0 %vm276_vm1, %v31_v33  ;;  %698 = vmatprep.mubr.msk.f32.mxu1 %vm276_vm1, %v39_v34 }
  0xde   :  { %687 = vmatmul.mubr.msk.f32.gmra.mrb[6].mxu0 %vm276_vm1, %v32_v35  ;;  %699 = vmatmul.mubr.msk.f32.gmra.mrb[6].mxu1 %vm276_vm1, %v40_v36 }
 0x1a5   :  { %v679_v37 = vpop.f32.mrb[0].mxu0  ;;  %v691_v38 = vpop.f32.mrb[0].mxu1 }
 0x1a6   :  { %752 = vtanh.f32 %v679_v37  ;;  %v395_v39 = vpop.f32.mrb[1].mxu0  ;;  %v435_v42 = vpop.f32.mrb[1].mxu1 }
 0x1a7   :  { %754 = vtanh.f32 %v395_v39  ;;  %v580_v39 = vpop.permute.xlu1 %579 }
 0x1a8   :  { %756 = vtanh.f32 %v691_v38 }
 0x1a9   :  { %v682_v43 = vpop.f32.mrb[2].mxu0  ;;  %758 = vtanh.f32 %v435_v42  ;;  %v694_v44 = vpop.f32.mrb[2].mxu1 }
 0x1aa   :  { %760 = vtanh.f32 %v682_v43  ;;  %v405_v45 = vpop.f32.mrb[3].mxu0  ;;  %v445_v46 = vpop.f32.mrb[3].mxu1 }
 0x1ab   :  { %762 = vtanh.f32 %v405_v45 }
 0x1ac   :  { %764 = vtanh.f32 %v694_v44 }
 0x1ad   :  { %v685_v47 = vpop.f32.mrb[4].mxu0  ;;  %766 = vtanh.f32 %v445_v46  ;;  %v697_v49 = vpop.f32.mrb[4].mxu1 }
 0x1ae   :  { %768 = vtanh.f32 %v685_v47  ;;  %v415_v50 = vpop.f32.mrb[5].mxu0  ;;  %v455_v51 = vpop.f32.mrb[5].mxu1 }
 0x1af   :  { %770 = vtanh.f32 %v415_v50 }
 0x1b0   :  { %v753_v52 = vpop.eup %752 }
 0x1b1   :  { %v755_v53 = vpop.eup %754  ;;  %v479_v54 = vadd.f32 1.0, %v753_v52  ;;  %v688_v55 = vpop.f32.mrb[6].mxu0 }
 0x1b2   :  { %v700_v56 = vpop.f32.mrb[6].mxu1  ;;  %v757_v57 = vpop.eup %756  ;;  %v478_v58 = vadd.f32 1.0, %v755_v53  ;;  %772 = vtanh.f32 %v688_v55 }
 0x1b3   :  { %v425_v59 = vpop.f32.mrb[7].mxu0  ;;  %v465_v60 = vpop.f32.mrb[7].mxu1  ;;  %v483_v62 = vmul.f32 0.5, %v479_v54 }
 0x1b4   :  { %v759_v61 = vpop.eup %758  ;;  %774 = vtanh.f32 %v425_v59  ;;  %v482_v0 = vmul.f32 0.5, %v478_v58 }
 0x1b5   :  { %v761_v63 = vpop.eup %760  ;;  %v519_v3 = vmul.f32 %v757_v57, %v483_v62  ;;  %776 = vtanh.f32 %v697_v49 }
 0x1b6   :  { %v763_v1 = vpop.eup %762  ;;  %v481_v2 = vadd.f32 1.0, %v761_v63  ;;  %v518_v6 = vmul.f32 %v759_v61, %v482_v0  ;;  %778 = vtanh.f32 %v455_v51 }
 0x1b7   :  { %v765_v4 = vpop.eup %764  ;;  %v480_v5 = vadd.f32 1.0, %v763_v1  ;;  %780 = vtanh.f32 %v700_v56  ;;  %v565_v56 = vrot.slane %v988_v16, 4 }
 0x1b8   :  { %v767_v7 = vpop.eup %766  ;;  %v485_v8 = vmul.f32 0.5, %v481_v2  ;;  %782 = vtanh.f32 %v465_v60 }
 0x1b9   :  { %v769_v9 = vpop.eup %768  ;;  %v484_v10 = vmul.f32 0.5, %v480_v5  ;;  %v566_v1 = vadd.f32 %v565_v56, %v988_v16  ;;  %v611_v16 = vstv %s1078_s5 }
 0x1ba   :  { %v771_v11 = vpop.eup %770  ;;  %v491_v12 = vadd.f32 1.0, %v769_v9  ;;  %v521_v13 = vmul.f32 %v765_v4, %v485_v8 }
 0x1bb   :  { %v490_v14 = vadd.f32 1.0, %v771_v11  ;;  %v520_v15 = vmul.f32 %v767_v7, %v484_v10  ;;  %v567_v4 = vrot.slane %v566_v1, 2 }
 0x1bc   :  { %v495_v17 = vmul.f32 0.5, %v491_v12  ;;  %v773_v18 = vpop.eup %772 }
 0x1bd   :  { %v494_v19 = vmul.f32 0.5, %v490_v14  ;;  %v493_v22 = vadd.f32 1.0, %v773_v18  ;;  %v568_v7 = vadd.f32 %v567_v4, %v566_v1 }
 0x1be   :  { %v775_v20 = vpop.eup %774  ;;  %v515_v21 = vmul.f32 %v495_v17, %v966_v24 }
 0x1bf   :  { %v514_v23 = vmul.f32 %v494_v19, %v968_v25  ;;  %v492_v26 = vadd.f32 1.0, %v775_v20  ;;  %v497_v28 = vmul.f32 0.5, %v493_v22  ;;  %v777_v31 = vpop.eup %776  ;;  %v569_v10 = vrot.slane %v568_v7, 1 }
 0x1c0   :  { %v523_v27 = vadd.f32 %v519_v3, %v515_v21  ;;  %v779_v33 = vpop.eup %778  ;;  %v507_v37 = vadd.f32 1.0, %v777_v31 }
 0x1c1   :  { %v522_v29 = vadd.f32 %v518_v6, %v514_v23  ;;  %v496_v30 = vmul.f32 0.5, %v492_v26  ;;  %v517_v32 = vmul.f32 %v497_v28, %v972_v40  ;;  %v781_v24 = vpop.eup %780  ;;  %v506_v38 = vadd.f32 1.0, %v779_v33  ;;  %v585_v40 = vpop.permute.xlu1 %584 }
 0x1c2   :  { %784 = vtanh.f32 %v523_v27  ;;  %v783_v25 = vpop.eup %782  ;;  %v511_v42 = vmul.f32 0.5, %v507_v37  ;;  %v509_v43 = vadd.f32 1.0, %v781_v24 }
 0x1c3   :  { %786 = vtanh.f32 %v522_v29  ;;  %v516_v34 = vmul.f32 %v496_v30, %v974_v41  ;;  %v525_v35 = vadd.f32 %v521_v13, %v517_v32  ;;  %v510_v44 = vmul.f32 0.5, %v506_v38 }
 0x1c4   :  { %v508_v45 = vadd.f32 1.0, %v783_v25  ;;  %v513_v50 = vmul.f32 0.5, %v509_v43  ;;  %v570_v13 = vadd.f32 %v569_v10, %v568_v7 }
 0x1c5   :  { %v524_v36 = vadd.f32 %v520_v15, %v516_v34  ;;  %788 = vtanh.f32 %v525_v35  ;;  %v590_v61 = vpop.permute.xlu1 %589 }
 0x1c6   :  { %v512_v41 = vmul.f32 0.5, %v508_v45 }
 0x1c7   :  { %790 = vtanh.f32 %v524_v36 }
 0x1cc   :  { %v785_v46 = vpop.eup %784 }
 0x1cd   :  { %v787_v47 = vpop.eup %786  ;;  %v531_v49 = vmul.f32 %v785_v46, %v511_v42 }
 0x1ce   :  { %v530_v51 = vmul.f32 %v787_v47, %v510_v44 }
 0x1cf   :  { %v593_v52 = vmul.f32 %v580_v39, %v531_v49  ;;  %v789_v53 = vpop.eup %788 }
 0x1d0   :  { %v592_v54 = vmul.f32 %v977_v48, %v530_v51  ;;  %v533_v58 = vmul.f32 %v789_v53, %v513_v50 }
 0x1d1   :  { %v791_v55 = vpop.eup %790  ;;  %v597_v57 = vsel %vm264_vm2, %v593_v52, 0.0 }
 0x1d2   :  { %v596_v59 = vsel %vm264_vm2, %v592_v54, 0.0  ;;  %v532_v60 = vmul.f32 %v791_v55, %v512_v41  ;;  %v595_v63 = vmul.f32 %v590_v61, %v533_v58 }
 0x1d3   :  { %v598_v62 = vadd.f32 %v597_v57, %v596_v59 }
 0x1d4   :  { %v594_v0 = vmul.f32 %v585_v40, %v532_v60  ;;  %v601_v48 = vsel %vm264_vm2, %v595_v63, 0.0 }
 0x1d6   :  { %v599_v2 = vsel %vm264_vm2, %v594_v0, 0.0 }
 0x1d7   :  { %v600_v3 = vadd.f32 %v599_v2, %v598_v62 }
 0x1d9   :  { %v602_v5 = vadd.f32 %v601_v48, %v600_v3 }
 0x1db   :  { %v603_v6 = vrot.slane %v602_v5, 4 }
 0x1dd   :  { %v604_v8 = vadd.f32 %v603_v6, %v602_v5 }
 0x1df   :  { %v605_v9 = vrot.slane %v604_v8, 2 }
 0x1e1   :  { %v606_v11 = vadd.f32 %v605_v9, %v604_v8 }
 0x1e3   :  { %v607_v12 = vrot.slane %v606_v11, 1 }
 0x1e5   :  { %v608_v14 = vadd.f32 %v607_v12, %v606_v11 }
 0x1e7   :  { %v609_v15 = vadd.f32 %v608_v14, %v570_v13 }
 0x1e9   :  { %v612_v17 = vadd.f32 %v611_v16, %v609_v15 }
 0x1eb   :  { %613 = vst.msk [vmem:[#allocation4] sm:$0x1] %vm262_vm0, %v612_v17 }
 0x1ec   :  { %803 = shalt.err (!%p800_p4)
}
 0x1ed   :  { %s804_s24 = scalar_lea.hbm %s1079_s6, 16 }
 0x1ee   :  { %p805_p5 = scmp.ne.s32.totalorder %s1079_s6, %s804_s24  ;;  %p808_p6 = scmp.lt.u32.totalorder %s804_s24, %s1079_s6 }
 0x1f0   :  { %p810_p7 = pnand %p808_p6, %p805_p5 }
 0x1f2   :  { %813 = shalt.err (!%p810_p7)
}
 0x1f3   :  { %623 = dma.vmem_to_hbm [thread:$0]  %s621_s19, 16, %s1079_s6, [#allocation5]  }
 0x1f4   :  { %814 = dma.done.wait [#allocation5], 16  }
 0x1f5   :  { %815 = vsyncadd [#allocation5], 4294967280 }
 0x1f6   :  { %627 = vsyncpa [#allocation5], 1 }

</bundles_post_ra>
